<compile_context>
chip_gen: v7x
topology: tpu7x:2x2x1
jax: 0.10.0
libtpu: 0.0.40
codegen_flags: <defaults>
</compile_context>

<pallas_src>
import functools

import jax
import jax.numpy as jnp
from jax.experimental import pallas as pl
from jax.experimental.pallas import tpu as pltpu


def _round_up(x, m):
    return ((x + m - 1) // m) * m


# ---------------------------------------------------------------------------
# Kernel 1: feature transform  h = X @ W        (N, F) @ (F, H) -> (N, H)
# ---------------------------------------------------------------------------
def _xw_kernel(x_ref, w_ref, o_ref, acc_ref):
    k = pl.program_id(2)

    @pl.when(k == 0)
    def _():
        acc_ref[...] = jnp.zeros_like(acc_ref)

    acc_ref[...] += jnp.dot(
        x_ref[...], w_ref[...], preferred_element_type=jnp.float32
    )

    @pl.when(k == pl.num_programs(2) - 1)
    def _():
        o_ref[...] = acc_ref[...].astype(o_ref.dtype)


# ---------------------------------------------------------------------------
# Kernel 2: aggregation + activation  out = relu(A @ h)
#   fetch_ref / mask_ref: scalar-prefetched 1-D SMEM tables (flattened
#   (nbi, nbk)); `fetch` drives the BlockSpec index_maps (DMA reuse for zero
#   adjacency tiles), `mask` gates the MXU dot.
# ---------------------------------------------------------------------------
def _agg_relu_kernel(fetch_ref, mask_ref, adj_ref, h_ref, o_ref, acc_ref, *, nbk):
    del fetch_ref  # consumed only by the index_maps
    i = pl.program_id(0)
    k = pl.program_id(2)

    @pl.when(k == 0)
    def _():
        acc_ref[...] = jnp.zeros_like(acc_ref)

    @pl.when(mask_ref[i * nbk + k] != 0)
    def _():
        acc_ref[...] += jnp.dot(
            adj_ref[...], h_ref[...], preferred_element_type=jnp.float32
        )

    @pl.when(k == pl.num_programs(2) - 1)
    def _():
        o_ref[...] = jnp.maximum(acc_ref[...], 0.0).astype(o_ref.dtype)


# ---------------------------------------------------------------------------
# Block-sparsity tables (1-D, SMEM-friendly):
#   mask[i*nb + k]  = 1 iff adjacency block (i, k) has any nonzero
#   fetch[i*nb + k] = k for nonzero blocks; nearest nonzero block index for
#                     zero blocks (so consecutive zero blocks keep the same
#                     BlockSpec index -> Pallas skips the HBM DMA for them).
# ---------------------------------------------------------------------------
def _block_sparsity(adj_p_f32, tn):
    Np = adj_p_f32.shape[0]
    nb = Np // tn
    blk = jnp.abs(adj_p_f32).reshape(nb, tn, nb, tn).sum(axis=(1, 3))
    mask = (blk > 0).astype(jnp.int32)                        # (nb, nb)

    ks = jnp.arange(nb, dtype=jnp.int32)[None, :]
    marked = jnp.where(mask != 0, ks, jnp.int32(-1))
    ffill = jax.lax.cummax(marked, axis=1)                    # last nnz idx <= k, or -1
    has_nnz = mask.sum(axis=1) > 0
    first_nnz = jnp.argmax(mask, axis=1).astype(jnp.int32)
    lead_fill = jnp.where(has_nnz, first_nnz, 0)[:, None]
    fetch = jnp.where(ffill >= 0, ffill, lead_fill).astype(jnp.int32)

    return fetch.reshape(-1), mask.reshape(-1)


# ---------------------------------------------------------------------------
# Wrapper
# ---------------------------------------------------------------------------
def graph_conv_sparse_forward(adj, x, weight, *,
                              tn=512, th=512, tf=256,
                              compute_dtype=jnp.bfloat16):
    """relu(adj @ (x @ weight)) — GraphConvSparse.forward.

    adj:    (N, N) dense (normalized) adjacency
    x:      (N, F) node features
    weight: (F, H) parameter, (input_dim, output_dim) as in glorot_init
    compute_dtype: MXU-input dtype (bf16 default); accumulation stays f32.
    """
    N, F = x.shape
    F2, H = weight.shape
    assert F2 == F and adj.shape == (N, N)

    # Adaptive, MXU/lane-friendly tiles.  A single `tn` is used for the
    # adjacency row tile AND the aggregation-reduction tile so the padded N is
    # a multiple of both (fixes the tm != tk divisibility hazard).
    tn = min(tn, _round_up(N, 256))
    th = min(th, _round_up(H, 128))
    tf = min(tf, _round_up(F, 128))

    Np = _round_up(N, tn)
    Hp = _round_up(H, th)
    Fp = _round_up(F, tf)
    nbk = Np // tn

    # Lane-dense padding + compute-dtype cast (bf16 by default).
    x_p = jnp.zeros((Np, Fp), compute_dtype).at[:N, :F].set(x.astype(compute_dtype))
    w_p = jnp.zeros((Fp, Hp), compute_dtype).at[:F, :H].set(
        weight.astype(compute_dtype))
    adj_f32 = jnp.zeros((Np, Np), jnp.float32).at[:N, :N].set(
        adj.astype(jnp.float32))
    adj_p = adj_f32.astype(compute_dtype)

    # TODO(synk): the adjacency (and hence fetch/mask) is static across GCN
    # layers/epochs — cache these tables per graph (or build them straight
    # from the edge list) instead of re-deriving from the dense matrix here.
    fetch, mask = _block_sparsity(adj_f32, tn)

    cparams = pltpu.CompilerParams(
        dimension_semantics=("parallel", "parallel", "arbitrary"),
        vmem_limit_bytes=48 * 1024 * 1024,   # plenty for 512-edge bf16 tiles,
                                             # still headroom on v7x's 64 MiB
    )

    # ---- pass 1: h = X @ W  (tiled, f32 accumulator, emits compute_dtype) --
    h = pl.pallas_call(
        _xw_kernel,
        out_shape=jax.ShapeDtypeStruct((Np, Hp), compute_dtype),
        grid_spec=pltpu.PrefetchScalarGridSpec(
            num_scalar_prefetch=0,
            grid=(Np // tn, Hp // th, Fp // tf),
            in_specs=[
                pl.BlockSpec((tn, tf), lambda i, j, k: (i, k)),
                pl.BlockSpec((tf, th), lambda i, j, k: (k, j)),
            ],
            out_specs=pl.BlockSpec((tn, th), lambda i, j, k: (i, j)),
            scratch_shapes=[pltpu.VMEM((tn, th), jnp.float32)],
        ),
        compiler_params=cparams,
    )(x_p, w_p)

    # ---- pass 2: out = relu(A @ h)  (block-sparse DMA + MXU skip) ----------
    def adj_map(i, j, k, fetch_ref, mask_ref):
        # Zero blocks reuse the previous nonzero block index -> no new DMA.
        return (i, fetch_ref[i * nbk + k])

    def h_map(i, j, k, fetch_ref, mask_ref):
        return (fetch_ref[i * nbk + k], j)

    def out_map(i, j, k, fetch_ref, mask_ref):
        return (i, j)

    out_p = pl.pallas_call(
        functools.partial(_agg_relu_kernel, nbk=nbk),
        out_shape=jax.ShapeDtypeStruct((Np, Hp), jnp.float32),
        grid_spec=pltpu.PrefetchScalarGridSpec(
            num_scalar_prefetch=2,
            grid=(Np // tn, Hp // th, nbk),
            in_specs=[
                pl.BlockSpec((tn, tn), adj_map),
                pl.BlockSpec((tn, th), h_map),
            ],
            out_specs=pl.BlockSpec((tn, th), out_map),
            scratch_shapes=[pltpu.VMEM((tn, th), jnp.float32)],
        ),
        compiler_params=cparams,
    )(fetch, mask, adj_p, h)

    return out_p[:N, :H]


if __name__ == "__main__":
    key = jax.random.PRNGKey(0)
    k_x, k_w = jax.random.split(key, 2)

    # Small shapes consistent with GraphConvSparse(input_dim, output_dim, adj)
    num_nodes = 8
    input_dim = 16
    output_dim = 32

    # node features
    x = jax.random.normal(k_x, (num_nodes, input_dim), dtype=jnp.float32)

    # glorot_init: uniform in [-r, r], r = sqrt(6/(in+out)), shape (in, out)
    r = (6.0 / (input_dim + output_dim)) ** 0.5
    weight = jax.random.uniform(k_w, (input_dim, output_dim),
                                minval=-r, maxval=r, dtype=jnp.float32)

    # deterministic small edge list -> symmetric-normalized dense adjacency
    src = jnp.array([0, 1, 2, 3, 4, 5, 6, 7, 0, 2, 4, 6], dtype=jnp.int32)
    dst = jnp.array([1, 2, 3, 4, 5, 6, 7, 0, 4, 6, 0, 2], dtype=jnp.int32)
    a = jnp.zeros((num_nodes, num_nodes), jnp.float32)
    a = a.at[dst, src].set(1.0).at[src, dst].set(1.0)
    a = a + jnp.eye(num_nodes, dtype=jnp.float32)            # A + I
    deg = a.sum(axis=1)
    dinv = jax.lax.rsqrt(jnp.where(deg > 0, deg, 1.0))
    adj = dinv[:, None] * a * dinv[None, :]                   # D^-1/2 (A+I) D^-1/2

    # plain-JAX reference of the module's forward
    ref = jnp.maximum(adj @ (x @ weight), 0.0)

    # f32 MXU path: tight agreement
    out_f32 = jax.block_until_ready(
        graph_conv_sparse_forward(adj, x, weight, compute_dtype=jnp.float32))
    assert out_f32.shape == (num_nodes, output_dim)
    assert jnp.allclose(out_f32, ref, atol=1e-5, rtol=1e-5)

    # default bf16 MXU path (f32 accumulation): looser tolerance vs f32 ref
    out = jax.block_until_ready(graph_conv_sparse_forward(adj, x, weight))
    assert out.shape == (num_nodes, output_dim)
    assert jnp.allclose(out, ref, atol=5e-2, rtol=5e-2)

    print("KERNEL_OK")
</pallas_src>

<mosaic_0001>
module attributes {stable_mosaic.version = 11 : i64} {
  func.func @_xw_kernel(%arg0: i32, %arg1: i32, %arg2: i32, %arg3: memref<256x128xf32, #tpu.memory_space<vmem>>, %arg4: memref<128x128xf32, #tpu.memory_space<vmem>>, %arg5: memref<256x128xf32, #tpu.memory_space<vmem>>, %arg6: memref<256x128xf32, #tpu.memory_space<vmem>>) attributes {dimension_semantics = [#tpu.dimension_semantics<parallel>, #tpu.dimension_semantics<parallel>, #tpu.dimension_semantics<arbitrary>], iteration_bounds = array<i64: 1, 1, 1>, scalar_prefetch = 0 : i64, scratch_operands = 1 : i64, tpu.core_type = #tpu.core_type<tc>, window_params = [{transform_indices = @transform_0, window_bounds = array<i64: 256, 128>}, {transform_indices = @transform_1, window_bounds = array<i64: 128, 128>}, {transform_indices = @transform_2, window_bounds = array<i64: 256, 128>}]} {
    %c0_i32 = arith.constant 0 : i32
    %0 = arith.cmpi eq, %arg2, %c0_i32 : i32
    %1 = arith.extui %0 : i1 to i32
    %c0_i32_0 = arith.constant 0 : i32
    %2 = arith.cmpi ne, %1, %c0_i32_0 : i32
    scf.if %2 {
      %cst_10 = arith.constant 0.000000e+00 : f32
      %12 = vector.broadcast %cst_10 : f32 to vector<256x128xf32>
      %c0_11 = arith.constant 0 : index
      %c0_12 = arith.constant 0 : index
      %13 = vector.load %arg6[%c0_11, %c0_12] : memref<256x128xf32, #tpu.memory_space<vmem>>, vector<256x128xf32>
      tpu.vector_store %arg6[%c0_11, %c0_12], %12 {strides = array<i32>} : memref<256x128xf32, #tpu.memory_space<vmem>>, vector<256x128xf32>,
    } else {
    }
    %c0 = arith.constant 0 : index
    %c0_1 = arith.constant 0 : index
    %3 = vector.load %arg6[%c0, %c0_1] : memref<256x128xf32, #tpu.memory_space<vmem>>, vector<256x128xf32>
    %c0_2 = arith.constant 0 : index
    %c0_3 = arith.constant 0 : index
    %4 = vector.load %arg3[%c0_2, %c0_3] : memref<256x128xf32, #tpu.memory_space<vmem>>, vector<256x128xf32>
    %c0_4 = arith.constant 0 : index
    %c0_5 = arith.constant 0 : index
    %5 = vector.load %arg4[%c0_4, %c0_5] : memref<128x128xf32, #tpu.memory_space<vmem>>, vector<128x128xf32>
    %cst = arith.constant dense<0.000000e+00> : vector<256x128xf32>
    %6 = tpu.matmul %4, %5, %cst {dimension_numbers = #tpu.dot_dimension_numbers<[1], [0], [0], [1], [0, 0, 1, 1], [], []>} : vector<256x128xf32>, vector<128x128xf32>, vector<256x128xf32> -> vector<256x128xf32>
    %7 = arith.addf %3, %6 : vector<256x128xf32>
    %c0_6 = arith.constant 0 : index
    %c0_7 = arith.constant 0 : index
    %8 = vector.load %arg6[%c0_6, %c0_7] : memref<256x128xf32, #tpu.memory_space<vmem>>, vector<256x128xf32>
    tpu.vector_store %arg6[%c0_6, %c0_7], %7 {strides = array<i32>} : memref<256x128xf32, #tpu.memory_space<vmem>>, vector<256x128xf32>,
    %c0_i32_8 = arith.constant 0 : i32
    %9 = arith.cmpi eq, %arg2, %c0_i32_8 : i32
    %10 = arith.extui %9 : i1 to i32
    %c0_i32_9 = arith.constant 0 : i32
    %11 = arith.cmpi ne, %10, %c0_i32_9 : i32
    scf.if %11 {
      %c0_10 = arith.constant 0 : index
      %c0_11 = arith.constant 0 : index
      %12 = vector.load %arg6[%c0_10, %c0_11] : memref<256x128xf32, #tpu.memory_space<vmem>>, vector<256x128xf32>
      %c0_12 = arith.constant 0 : index
      %c0_13 = arith.constant 0 : index
      %13 = vector.load %arg5[%c0_12, %c0_13] : memref<256x128xf32, #tpu.memory_space<vmem>>, vector<256x128xf32>
      tpu.vector_store %arg5[%c0_12, %c0_13], %12 {strides = array<i32>} : memref<256x128xf32, #tpu.memory_space<vmem>>, vector<256x128xf32>,
    } else {
    }
    return
  }
  func.func @transform_0(%arg0: i32, %arg1: i32, %arg2: i32) -> (i32, i32) {
    %c0_i32 = arith.constant 0 : i32
    return %arg0, %arg2 : i32, i32
  }
  func.func @transform_1(%arg0: i32, %arg1: i32, %arg2: i32) -> (i32, i32) {
    %c0_i32 = arith.constant 0 : i32
    return %arg2, %arg1 : i32, i32
  }
  func.func @transform_2(%arg0: i32, %arg1: i32, %arg2: i32) -> (i32, i32) {
    %c0_i32 = arith.constant 0 : i32
    return %arg0, %arg1 : i32, i32
  }
}

</mosaic_0001>

<bundles_post_ra>
// kernel: tpu_custom_call.1
= control target key start
LH: loop header
LB: loop body
LE: loop exit
PB: predicated region body
PF: predicated region fallthrough
CT: control target
= control target key end

     0   :  { %7 = vsyncpa [#allocation4], 0  ;;  %s848_s0 = inlined_call_operand.hbm [shape: f32[256,128], index: 0, kind: input, shape index: {}]   ;;  %s849_s1 = inlined_call_operand.hbm [shape: f32[128,128], index: 1, kind: input, shape index: {}]   ;;  %s850_s2 = inlined_call_operand.hbm [shape: f32[256,128], index: 2, kind: output, shape index: {}]  }
   0x1   :  { %8 = vsyncpa [#allocation7], 0 }
   0x2   :  { %9 = vsyncpa [#allocation5], 0  ;;  %s783_s9 = smov [#allocation3]   ;;  %s711_s13 = scalar_lea.hbm %s848_s0, 4096 }
   0x3   :  { %s15_s10 = sshll.u32 %s783_s9, 4  ;;  %p712_p0 = scmp.ne.s32.totalorder %s848_s0, %s711_s13  ;;  %s16_s10 = int_to_ptr.vmem [resolvable:$true] %s15_s10 }
   0x4   :  { %p715_p1 = scmp.lt.u32.totalorder %s711_s13, %s848_s0 }
   0x6   :  { %p717_p2 = pnand %p715_p1, %p712_p0 }
   0x8   :  { %720 = shalt.err (!%p717_p2)
}
   0x9   :  { %s721_s18 = scalar_lea.vmem %s16_s10, 4096  ;;  %p726_p4 = scmp.lt.s32.totalorder %s16_s10, %s16_s10 }
   0xa   :  { %p722_p3 = scmp.ne.s32.totalorder %s16_s10, %s721_s18  ;;  %p727_p5 = scmp.lt.s32.totalorder %s721_s18, %s721_s18 }
   0xc   :  { %p728_p6 = por %p727_p5, %p726_p4 }
   0xe   :  { %p729_p7 = pnand %p728_p6, %p722_p3 }
  0x10   :  { %732 = shalt.err (!%p729_p7)
}
  0x11   :  { %s784_s19 = smov 128   ;;  %s785_s20 = smov 8  }
  0x12   :  { %21 = dma.hbm_to_vmem [thread:$0]  %s848_s0, 4096, %s16_s10, [#allocation4], %s784_s19, %s784_s19, %s785_s20  }
  0x13   :  { %s786_s23 = smov [#allocation6]   ;;  %s733_s27 = scalar_lea.hbm %s849_s1, 2048 }
  0x14   :  { %s27_s24 = sshll.u32 %s786_s23, 4  ;;  %p734_p8 = scmp.ne.s32.totalorder %s849_s1, %s733_s27  ;;  %s28_s24 = int_to_ptr.vmem [resolvable:$true] %s27_s24 }
  0x15   :  { %p737_p9 = scmp.lt.u32.totalorder %s733_s27, %s849_s1 }
  0x17   :  { %p739_p10 = pnand %p737_p9, %p734_p8 }
  0x19   :  { %742 = shalt.err (!%p739_p10)
}
  0x1a   :  { %s743_s4 = scalar_lea.vmem %s28_s24, 2048  ;;  %p748_p12 = scmp.lt.s32.totalorder %s28_s24, %s28_s24 }
  0x1b   :  { %p744_p11 = scmp.ne.s32.totalorder %s28_s24, %s743_s4  ;;  %p749_p13 = scmp.lt.s32.totalorder %s743_s4, %s743_s4 }
  0x1d   :  { %p750_p0 = por %p749_p13, %p748_p12 }
  0x1f   :  { %p751_p1 = pnand %p750_p0, %p744_p11 }
  0x21   :  { %754 = shalt.err (!%p751_p1)
}
  0x22   :  { %33 = dma.hbm_to_vmem [thread:$0]  %s849_s1, 2048, %s28_s24, [#allocation7], %s784_s19, %s784_s19, %s785_s20  }
  0x23   :  { %777 = dma.done.wait [#allocation4], 4096  }
  0x24   :  { %778 = vsyncadd [#allocation4], 4294963200 }
  0x25   :  { %779 = dma.done.wait [#allocation7], 2048  }
  0x26   :  { %780 = vsyncadd [#allocation7], 4294965248  ;;  %v140_v0 = vld [vmem:[#allocation6] sm:$0xff]  ;;  %v141_v1 = vld [vmem:[#allocation6 + $0x8] sm:$0xff]  ;;  %s787_s1 = smov [#allocation8]  }
  0x27   :  { %v142_v2 = vld [vmem:[#allocation6 + $0x10] sm:$0xff]  ;;  %v658_v3 = vpack.c.bf16 %v141_v1, %v140_v0  ;;  %v143_v4 = vld [vmem:[#allocation6 + $0x18] sm:$0xff]  ;;  %v144_v6 = vld [vmem:[#allocation6 + $0x20] sm:$0xff]  ;;  %s517_s6 = sshll.u32 %s787_s1, 4  ;;  %s518_s6 = int_to_ptr.vmem [resolvable:$true] %s517_s6 }
  0x28   :  { %v662_v5 = vpack.c.bf16 %v143_v4, %v142_v2  ;;  %v145_v7 = vld [vmem:[#allocation6 + $0x28] sm:$0xff]  ;;  %v108_v9 = vld [vmem:[#allocation3] sm:$0xff]  ;;  %v146_v11 = vld [vmem:[#allocation6 + $0x30] sm:$0xff]  ;;  %s755_s7 = scalar_lea.vmem %s518_s6, 4096  ;;  %p760_p3 = scmp.lt.s32.totalorder %s518_s6, %s518_s6 }
  0x29   :  { %659 = vmatprep.subr.bf16.mxu0 %v658_v3  ;;  %690 = vmatprep.subr.bf16.mxu1 %v658_v3  ;;  %v666_v8 = vpack.c.bf16 %v145_v7, %v144_v6  ;;  %v124_v10 = vld [vmem:[#allocation3 + $0x80] sm:$0xff]  ;;  %v147_v12 = vld [vmem:[#allocation6 + $0x38] sm:$0xff]  ;;  %v149_v15 = vld [vmem:[#allocation6 + $0x48] sm:$0xff]  ;;  %p756_p2 = scmp.ne.s32.totalorder %s518_s6, %s755_s7  ;;  %p761_p4 = scmp.lt.s32.totalorder %s755_s7, %s755_s7 }
  0x2a   :  { %661 = vmatpush3.bf16.msra.mxu0 %v658_v3  ;;  %698 = vmatpush3.bf16.msra.mxu1 %v658_v3  ;;  %v670_v13 = vpack.c.bf16 %v147_v12, %v146_v11  ;;  %v148_v14 = vld [vmem:[#allocation6 + $0x40] sm:$0xff]  ;;  %v150_v17 = vld [vmem:[#allocation6 + $0x50] sm:$0xff]  ;;  %v151_v18 = vld [vmem:[#allocation6 + $0x58] sm:$0xff] }
  0x2b   :  { %663 = vmatprep.subr.bf16.mxu0 %v662_v5  ;;  %691 = vmatprep.subr.bf16.mxu1 %v662_v5  ;;  %v674_v16 = vpack.c.bf16 %v149_v15, %v148_v14  ;;  %v678_v19 = vpack.c.bf16 %v151_v18, %v150_v17  ;;  %v152_v20 = vld [vmem:[#allocation6 + $0x60] sm:$0xff]  ;;  %v153_v21 = vld [vmem:[#allocation6 + $0x68] sm:$0xff]  ;;  %v154_v23 = vld [vmem:[#allocation6 + $0x70] sm:$0xff]  ;;  %p762_p5 = por %p761_p4, %p760_p3 }
  0x2c   :  { %610 = vmatprep.mubr.f32.mxu0 %v108_v9  ;;  %634 = vmatprep.mubr.f32.mxu1 %v124_v10  ;;  %v682_v22 = vpack.c.bf16 %v153_v21, %v152_v20  ;;  %v155_v24 = vld [vmem:[#allocation6 + $0x78] sm:$0xff]  ;;  %v109_v26 = vld [vmem:[#allocation3 + $0x8] sm:$0xff]  ;;  %v110_v28 = vld [vmem:[#allocation3 + $0x10] sm:$0xff] }
  0x2d   :  { %v686_v25 = vpack.c.bf16 %v155_v24, %v154_v23  ;;  %v125_v27 = vld [vmem:[#allocation3 + $0x88] sm:$0xff]  ;;  %v126_v29 = vld [vmem:[#allocation3 + $0x90] sm:$0xff]  ;;  %v111_v30 = vld [vmem:[#allocation3 + $0x18] sm:$0xff]  ;;  %p763_p6 = pnand %p762_p5, %p756_p2 }
  0x2e   :  { %665 = vmatpush3.bf16.msra.mxu0 %v662_v5  ;;  %699 = vmatpush3.bf16.msra.mxu1 %v662_v5  ;;  %v127_v31 = vld [vmem:[#allocation3 + $0x98] sm:$0xff]  ;;  %v112_v32 = vld [vmem:[#allocation3 + $0x20] sm:$0xff]  ;;  %v113_v34 = vld [vmem:[#allocation3 + $0x28] sm:$0xff] }
  0x2f   :  { %667 = vmatprep.subr.bf16.mxu0 %v666_v8  ;;  %692 = vmatprep.subr.bf16.mxu1 %v666_v8  ;;  %v128_v33 = vld [vmem:[#allocation3 + $0xa0] sm:$0xff]  ;;  %v129_v35 = vld [vmem:[#allocation3 + $0xa8] sm:$0xff]  ;;  %v114_v36 = vld [vmem:[#allocation3 + $0x30] sm:$0xff] }
  0x30   :  { %v130_v37 = vld [vmem:[#allocation3 + $0xb0] sm:$0xff]  ;;  %v115_v38 = vld [vmem:[#allocation3 + $0x38] sm:$0xff]  ;;  %v116_v40 = vld [vmem:[#allocation3 + $0x40] sm:$0xff] }
  0x31   :  { %v131_v39 = vld [vmem:[#allocation3 + $0xb8] sm:$0xff]  ;;  %v132_v41 = vld [vmem:[#allocation3 + $0xc0] sm:$0xff]  ;;  %v117_v42 = vld [vmem:[#allocation3 + $0x48] sm:$0xff] }
  0x32   :  { %669 = vmatpush3.bf16.msra.mxu0 %v666_v8  ;;  %700 = vmatpush3.bf16.msra.mxu1 %v666_v8  ;;  %v133_v43 = vld [vmem:[#allocation3 + $0xc8] sm:$0xff]  ;;  %v118_v44 = vld [vmem:[#allocation3 + $0x50] sm:$0xff]  ;;  %v119_v46 = vld [vmem:[#allocation3 + $0x58] sm:$0xff] }
  0x33   :  { %671 = vmatprep.subr.bf16.mxu0 %v670_v13  ;;  %693 = vmatprep.subr.bf16.mxu1 %v670_v13  ;;  %v134_v45 = vld [vmem:[#allocation3 + $0xd0] sm:$0xff]  ;;  %v135_v47 = vld [vmem:[#allocation3 + $0xd8] sm:$0xff]  ;;  %v120_v48 = vld [vmem:[#allocation3 + $0x60] sm:$0xff] }
  0x34   :  { %v136_v49 = vld [vmem:[#allocation3 + $0xe0] sm:$0xff]  ;;  %v121_v50 = vld [vmem:[#allocation3 + $0x68] sm:$0xff]  ;;  %v122_v52 = vld [vmem:[#allocation3 + $0x70] sm:$0xff] }
  0x35   :  { %v137_v51 = vld [vmem:[#allocation3 + $0xe8] sm:$0xff]  ;;  %v138_v53 = vld [vmem:[#allocation3 + $0xf0] sm:$0xff]  ;;  %v123_v54 = vld [vmem:[#allocation3 + $0x78] sm:$0xff] }
  0x36   :  { %673 = vmatpush3.bf16.msra.mxu0 %v670_v13  ;;  %701 = vmatpush3.bf16.msra.mxu1 %v670_v13  ;;  %v139_v55 = vld [vmem:[#allocation3 + $0xf8] sm:$0xff] }
  0x37   :  { %675 = vmatprep.subr.bf16.mxu0 %v674_v16  ;;  %694 = vmatprep.subr.bf16.mxu1 %v674_v16 }
  0x3a   :  { %677 = vmatpush3.bf16.msra.mxu0 %v674_v16  ;;  %702 = vmatpush3.bf16.msra.mxu1 %v674_v16 }
  0x3b   :  { %679 = vmatprep.subr.bf16.mxu0 %v678_v19  ;;  %695 = vmatprep.subr.bf16.mxu1 %v678_v19 }
  0x3e   :  { %681 = vmatpush3.bf16.msra.mxu0 %v678_v19  ;;  %703 = vmatpush3.bf16.msra.mxu1 %v678_v19 }
  0x3f   :  { %683 = vmatprep.subr.bf16.mxu0 %v682_v22  ;;  %696 = vmatprep.subr.bf16.mxu1 %v682_v22 }
  0x42   :  { %685 = vmatpush3.bf16.msra.mxu0 %v682_v22  ;;  %704 = vmatpush3.bf16.msra.mxu1 %v682_v22 }
  0x43   :  { %687 = vmatprep.subr.bf16.mxu0 %v686_v25  ;;  %697 = vmatprep.subr.bf16.mxu1 %v686_v25 }
  0x46   :  { %689 = vmatpush3.bf16.msra.mxu0 %v686_v25  ;;  %705 = vmatpush3.bf16.msra.mxu1 %v686_v25 }
  0x49   :  { %611 = vmatmul.mubr.f32.vlgmr.msra.gmra.mrb[0].mxu0 %v109_v26  ;;  %635 = vmatmul.mubr.f32.vlgmr.msra.gmra.mrb[0].mxu1 %v125_v27 }
  0x4a   :  { %613 = vmatprep.mubr.f32.mxu0 %v110_v28  ;;  %637 = vmatprep.mubr.f32.mxu1 %v126_v29 }
  0x4d   :  { %614 = vmatmul.mubr.f32.gmra.mrb[2].mxu0 %v111_v30  ;;  %638 = vmatmul.mubr.f32.gmra.mrb[2].mxu1 %v127_v31 }
  0x4e   :  { %616 = vmatprep.mubr.f32.mxu0 %v112_v32  ;;  %640 = vmatprep.mubr.f32.mxu1 %v128_v33 }
  0x51   :  { %617 = vmatmul.mubr.f32.gmra.mrb[4].mxu0 %v113_v34  ;;  %641 = vmatmul.mubr.f32.gmra.mrb[4].mxu1 %v129_v35 }
  0x52   :  { %619 = vmatprep.mubr.f32.mxu0 %v114_v36  ;;  %643 = vmatprep.mubr.f32.mxu1 %v130_v37 }
  0x55   :  { %620 = vmatmul.mubr.f32.gmra.mrb[6].mxu0 %v115_v38  ;;  %644 = vmatmul.mubr.f32.gmra.mrb[6].mxu1 %v131_v39 }
  0x56   :  { %622 = vmatprep.mubr.f32.mxu0 %v116_v40  ;;  %646 = vmatprep.mubr.f32.mxu1 %v132_v41 }
  0x59   :  { %623 = vmatmul.mubr.f32.gmra.mrb[8].mxu0 %v117_v42  ;;  %647 = vmatmul.mubr.f32.gmra.mrb[8].mxu1 %v133_v43 }
  0x5a   :  { %625 = vmatprep.mubr.f32.mxu0 %v118_v44  ;;  %649 = vmatprep.mubr.f32.mxu1 %v134_v45 }
  0x5d   :  { %626 = vmatmul.mubr.f32.gmra.mrb[10].mxu0 %v119_v46  ;;  %650 = vmatmul.mubr.f32.gmra.mrb[10].mxu1 %v135_v47 }
  0x5e   :  { %628 = vmatprep.mubr.f32.mxu0 %v120_v48  ;;  %652 = vmatprep.mubr.f32.mxu1 %v136_v49 }
  0x61   :  { %629 = vmatmul.mubr.f32.gmra.mrb[12].mxu0 %v121_v50  ;;  %653 = vmatmul.mubr.f32.gmra.mrb[12].mxu1 %v137_v51 }
  0x62   :  { %631 = vmatprep.mubr.f32.mxu0 %v122_v52  ;;  %655 = vmatprep.mubr.f32.mxu1 %v138_v53 }
  0x65   :  { %632 = vmatmul.mubr.f32.gmra.mrb[14].mxu0 %v123_v54  ;;  %656 = vmatmul.mubr.f32.gmra.mrb[14].mxu1 %v139_v55 }
 0x11c   :  { %v612_v56 = vpop.f32.mrb[0].mxu0  ;;  %v636_v57 = vpop.f32.mrb[0].mxu1 }
 0x11d   :  { %481 = vst [vmem:[#allocation8 + $0x8] sm:$0xff] %v612_v56  ;;  %497 = vst [vmem:[#allocation8 + $0x88] sm:$0xff] %v636_v57  ;;  %v222_v58 = vpop.f32.mrb[1].mxu0  ;;  %v302_v59 = vpop.f32.mrb[1].mxu1 }
 0x11e   :  { %480 = vst [vmem:[#allocation8] sm:$0xff] %v222_v58  ;;  %496 = vst [vmem:[#allocation8 + $0x80] sm:$0xff] %v302_v59 }
 0x120   :  { %v615_v60 = vpop.f32.mrb[2].mxu0  ;;  %v639_v61 = vpop.f32.mrb[2].mxu1 }
 0x121   :  { %483 = vst [vmem:[#allocation8 + $0x18] sm:$0xff] %v615_v60  ;;  %499 = vst [vmem:[#allocation8 + $0x98] sm:$0xff] %v639_v61  ;;  %v232_v62 = vpop.f32.mrb[3].mxu0  ;;  %v312_v63 = vpop.f32.mrb[3].mxu1 }
 0x122   :  { %482 = vst [vmem:[#allocation8 + $0x10] sm:$0xff] %v232_v62  ;;  %498 = vst [vmem:[#allocation8 + $0x90] sm:$0xff] %v312_v63 }
 0x124   :  { %v618_v0 = vpop.f32.mrb[4].mxu0  ;;  %v642_v1 = vpop.f32.mrb[4].mxu1 }
 0x125   :  { %485 = vst [vmem:[#allocation8 + $0x28] sm:$0xff] %v618_v0  ;;  %501 = vst [vmem:[#allocation8 + $0xa8] sm:$0xff] %v642_v1  ;;  %v242_v2 = vpop.f32.mrb[5].mxu0  ;;  %v322_v3 = vpop.f32.mrb[5].mxu1 }
 0x126   :  { %484 = vst [vmem:[#allocation8 + $0x20] sm:$0xff] %v242_v2  ;;  %500 = vst [vmem:[#allocation8 + $0xa0] sm:$0xff] %v322_v3 }
 0x128   :  { %v621_v4 = vpop.f32.mrb[6].mxu0  ;;  %v645_v5 = vpop.f32.mrb[6].mxu1 }
 0x129   :  { %487 = vst [vmem:[#allocation8 + $0x38] sm:$0xff] %v621_v4  ;;  %503 = vst [vmem:[#allocation8 + $0xb8] sm:$0xff] %v645_v5  ;;  %v252_v6 = vpop.f32.mrb[7].mxu0  ;;  %v332_v7 = vpop.f32.mrb[7].mxu1 }
 0x12a   :  { %486 = vst [vmem:[#allocation8 + $0x30] sm:$0xff] %v252_v6  ;;  %502 = vst [vmem:[#allocation8 + $0xb0] sm:$0xff] %v332_v7 }
 0x12c   :  { %v624_v8 = vpop.f32.mrb[8].mxu0  ;;  %v648_v9 = vpop.f32.mrb[8].mxu1 }
 0x12d   :  { %489 = vst [vmem:[#allocation8 + $0x48] sm:$0xff] %v624_v8  ;;  %505 = vst [vmem:[#allocation8 + $0xc8] sm:$0xff] %v648_v9  ;;  %v262_v10 = vpop.f32.mrb[9].mxu0  ;;  %v342_v11 = vpop.f32.mrb[9].mxu1 }
 0x12e   :  { %488 = vst [vmem:[#allocation8 + $0x40] sm:$0xff] %v262_v10  ;;  %504 = vst [vmem:[#allocation8 + $0xc0] sm:$0xff] %v342_v11 }
 0x130   :  { %v627_v12 = vpop.f32.mrb[10].mxu0  ;;  %v651_v13 = vpop.f32.mrb[10].mxu1 }
 0x131   :  { %491 = vst [vmem:[#allocation8 + $0x58] sm:$0xff] %v627_v12  ;;  %507 = vst [vmem:[#allocation8 + $0xd8] sm:$0xff] %v651_v13  ;;  %v272_v14 = vpop.f32.mrb[11].mxu0  ;;  %v352_v15 = vpop.f32.mrb[11].mxu1 }
 0x132   :  { %490 = vst [vmem:[#allocation8 + $0x50] sm:$0xff] %v272_v14  ;;  %506 = vst [vmem:[#allocation8 + $0xd0] sm:$0xff] %v352_v15 }
 0x134   :  { %v630_v16 = vpop.f32.mrb[12].mxu0  ;;  %v654_v17 = vpop.f32.mrb[12].mxu1 }
 0x135   :  { %493 = vst [vmem:[#allocation8 + $0x68] sm:$0xff] %v630_v16  ;;  %509 = vst [vmem:[#allocation8 + $0xe8] sm:$0xff] %v654_v17  ;;  %v282_v18 = vpop.f32.mrb[13].mxu0  ;;  %v362_v19 = vpop.f32.mrb[13].mxu1 }
 0x136   :  { %492 = vst [vmem:[#allocation8 + $0x60] sm:$0xff] %v282_v18  ;;  %508 = vst [vmem:[#allocation8 + $0xe0] sm:$0xff] %v362_v19 }
 0x138   :  { %v633_v20 = vpop.f32.mrb[14].mxu0  ;;  %v657_v21 = vpop.f32.mrb[14].mxu1 }
 0x139   :  { %495 = vst [vmem:[#allocation8 + $0x78] sm:$0xff] %v633_v20  ;;  %511 = vst [vmem:[#allocation8 + $0xf8] sm:$0xff] %v657_v21  ;;  %v292_v22 = vpop.f32.mrb[15].mxu0  ;;  %v372_v23 = vpop.f32.mrb[15].mxu1 }
 0x13a   :  { %494 = vst [vmem:[#allocation8 + $0x70] sm:$0xff] %v292_v22  ;;  %510 = vst [vmem:[#allocation8 + $0xf0] sm:$0xff] %v372_v23 }
 0x13b   :  { %766 = shalt.err (!%p763_p6)
}
 0x13c   :  { %s767_s10 = scalar_lea.hbm %s850_s2, 4096 }
 0x13d   :  { %p768_p7 = scmp.ne.s32.totalorder %s850_s2, %s767_s10  ;;  %p771_p8 = scmp.lt.u32.totalorder %s767_s10, %s850_s2 }
 0x13f   :  { %p773_p9 = pnand %p771_p8, %p768_p7 }
 0x141   :  { %776 = shalt.err (!%p773_p9)
}
 0x142   :  { %523 = dma.vmem_to_hbm [thread:$0]  %s518_s6, 4096, %s850_s2, [#allocation5], %s784_s19, %s784_s19, %s785_s20  }
 0x143   :  { %781 = dma.done.wait [#allocation5], 4096  }
 0x144   :  { %782 = vsyncadd [#allocation5], 4294963200 }
 0x145   :  { %527 = vsyncpa [#allocation4], 1 }
 0x146   :  { %528 = vsyncpa [#allocation7], 1 }
 0x147   :  { %529 = vsyncpa [#allocation5], 1 }

</bundles_post_ra>
